<compile_context>
chip_gen: v7x
topology: tpu7x:2x2x1
jax: 0.10.0
libtpu: 0.0.40
codegen_flags: <defaults>
</compile_context>

<pallas_src>
import functools
import math

import jax
import jax.numpy as jnp
from jax.experimental import pallas as pl
from jax.experimental.pallas import tpu as pltpu

_NEG_LOG_1E4 = -math.log(1e-4)  # == -log(clip floor of the one-hot) = 9.2103403...


def _sce_loss_kernel(pred_ref, labels_ref, out_ref, *, n_total):
    pid = pl.program_id(0)
    tile_n, c = pred_ref.shape                         # static Python ints

    x_tc = pred_ref[...]                               # (T, C), native dtype
    labels = labels_ref[...].astype(jnp.int32)         # (1, T)

    # --- lane-dense relayout on the MXU: x[c, t] = sum_k eye[c, k] * x_tc[t, k]
    eye = (jax.lax.broadcasted_iota(jnp.int32, (c, c), 0)
           == jax.lax.broadcasted_iota(jnp.int32, (c, c), 1)).astype(x_tc.dtype)
    x = jax.lax.dot_general(
        eye, x_tc, (((1,), (1,)), ((), ())),           # A @ B.T dimension numbers
        preferred_element_type=jnp.float32,
        precision=jax.lax.Precision.HIGHEST)           # (C, T) float32, exact copy

    # --- numerically stable softmax / log-softmax over the class axis (0) ---
    m = jnp.max(x, axis=0, keepdims=True)              # (1, T)
    shifted = x - m                                    # (C, T)
    e = jnp.exp(shifted)                               # (C, T)
    sum_e = jnp.sum(e, axis=0, keepdims=True)          # (1, T)
    inv_sum_e = pl.reciprocal(sum_e, approx=False)     # exact (see header)
    log_sum_e = jnp.log(sum_e)                         # (1, T)

    # --- one_hot(labels) via iota-compare along the class (sublane) axis ---
    class_ids = jax.lax.broadcasted_iota(jnp.int32, (c, tile_n), 0)
    one_hot = (class_ids == labels).astype(jnp.float32)             # (C, T)

    # --- per-example cross entropy: ce_i = log_sum_e - shifted[target] ---
    shifted_tgt = jnp.sum(one_hot * shifted, axis=0, keepdims=True)  # (1, T)
    ce_cols = log_sum_e - shifted_tgt                                # (1, T)

    # --- reverse cross entropy (algebraically simplified) ---
    p_clip = jnp.maximum(e * inv_sum_e, 1e-7)                        # (C, T)
    sum_p = jnp.sum(p_clip, axis=0, keepdims=True)                   # (1, T)
    e_tgt = jnp.sum(one_hot * e, axis=0, keepdims=True)              # (1, T)
    p_tgt = jnp.maximum(e_tgt * inv_sum_e, 1e-7)                     # (1, T)
    rce_cols = _NEG_LOG_1E4 * (sum_p - p_tgt)                        # (1, T)

    # --- per-tile partial sums; the tiny final reduce happens in plain JAX ---
    def _write(valid):
        ce = ce_cols if valid is None else jnp.where(valid, ce_cols, 0.0)
        rce = rce_cols if valid is None else jnp.where(valid, rce_cols, 0.0)
        out_ref[0, 0] = jnp.sum(ce)
        out_ref[0, 1] = jnp.sum(rce)

    if n_total % tile_n == 0:
        _write(None)                                   # no ragged tile exists
    else:
        last = pl.num_programs(0) - 1

        @pl.when(pid == last)                          # ragged tile: mask OOB rows
        def _():
            col = pid * tile_n + jax.lax.broadcasted_iota(
                jnp.int32, (1, tile_n), 1)
            _write(col < n_total)

        @pl.when(pid != last)                          # full tiles: unmasked path
        def _():
            _write(None)


def _vmem_capacity_bytes():
    """Physical VMEM per core; conservative 64 MiB (v7x) fallback."""
    try:
        cap = int(pltpu.get_tpu_info().vmem_capacity_bytes)
        if cap > 0:
            return cap
    except Exception:
        pass
    return 64 * 1024 * 1024


def _auto_tile_n(pred_dtype):
    """Largest batch tile that comfortably fits (double-buffered) in VMEM."""
    cap = _vmem_capacity_bytes()
    budget = min(cap // 2, 40 * 1024 * 1024)
    item = pred_dtype.itemsize
    # Per-row VMEM bytes: pred block lane-pads C -> 128 (x2 buffers), labels
    # (1, T) int32 sublane-pads to 8 rows (x2 buffers), plus ~10 float32
    # (16-sublane, T) temporaries for the transposed (C, T) compute.
    per_row = 2 * 128 * item + 2 * 8 * 4 + 10 * 16 * 4
    tile = (budget // per_row) // 128 * 128
    return int(max(128, min(tile, 32768)))


def sce_loss(pred, labels, *, alpha=0.1, beta=5.0, num_classes=10, tile_n=None):
    """pred: [N, C] logits (f32 or bf16), labels: [N] int class ids -> scalar loss."""
    n, c = pred.shape
    assert c == num_classes, "pred class dim must equal num_classes"

    # Keep narrow int label dtypes (int8/int16) to shrink their HBM stream;
    # the kernel widens to int32 for the iota compare.
    if (not jnp.issubdtype(labels.dtype, jnp.integer)) or labels.dtype.itemsize > 4:
        labels = labels.astype(jnp.int32)
    labels_2d = labels.reshape(1, n)          # metadata-only reshape (no HBM pass)

    if tile_n is None:
        tile_n = _auto_tile_n(pred.dtype)
    tile_n = int(tile_n)
    if tile_n >= n:
        tile_n = n                            # single block == full array dims
    else:
        tile_n = max(128, (tile_n // 128) * 128)   # lane/sublane friendly tiling
    grid_n = pl.cdiv(n, tile_n)

    cap = _vmem_capacity_bytes()
    vmem_limit = int(min(cap * 3 // 4, 96 * 1024 * 1024))

    kernel = functools.partial(_sce_loss_kernel, n_total=int(n))
    parts = pl.pallas_call(
        kernel,
        out_shape=jax.ShapeDtypeStruct((grid_n, 1, 2), jnp.float32),
        grid_spec=pltpu.PrefetchScalarGridSpec(
            num_scalar_prefetch=0,
            grid=(grid_n,),
            in_specs=[
                # Default double-buffering suffices (compute per step >> DMA);
                # pipeline_mode=pl.Buffered(3) is the next knob if DMA is exposed.
                pl.BlockSpec((tile_n, c), lambda i: (i, 0)),   # pred tile [T, C]
                pl.BlockSpec((1, tile_n), lambda i: (0, i)),   # labels tile [1, T]
            ],
            out_specs=pl.BlockSpec((None, 1, 2), lambda i: (i, 0, 0),
                                   memory_space=pltpu.MemorySpace.SMEM),
        ),
        compiler_params=pltpu.CompilerParams(
            # Independent per-tile partials -> "parallel": both v7x TensorCores
            # (and their aggregate HBM bandwidth) are usable; no-op on v5e/v6e.
            dimension_semantics=("parallel",),
            vmem_limit_bytes=vmem_limit,
        ),
    )(pred, labels_2d)

    parts = parts.reshape(grid_n, 2)
    inv_n = 1.0 / float(n)
    ce_mean = jnp.sum(parts[:, 0]) * inv_n
    rce_mean = jnp.sum(parts[:, 1]) * inv_n
    return alpha * ce_mean + beta * rce_mean


def _reference_sce_loss(pred, labels, *, alpha=0.1, beta=5.0, num_classes=10):
    # Plain-JAX reference mirroring the PyTorch forward (weight=None path).
    logits = pred.astype(jnp.float32)
    log_p = jax.nn.log_softmax(logits, axis=1)
    one_hot = jax.nn.one_hot(labels, num_classes, dtype=jnp.float32)
    ce = jnp.mean(-jnp.sum(one_hot * log_p, axis=1))
    p = jnp.clip(jax.nn.softmax(logits, axis=1), 1e-7, 1.0)
    oh_c = jnp.clip(one_hot, 1e-4, 1.0)
    rce = -jnp.sum(p * jnp.log(oh_c), axis=1)
    return alpha * ce + beta * jnp.mean(rce)


if __name__ == "__main__":
    key = jax.random.PRNGKey(0)
    k1, k2, k3, k4, k5, k6 = jax.random.split(key, 6)

    C = 10  # module default num_classes

    # Case 1: tiny batch (module-default sizing), auto tile -> single block.
    N1 = 8
    pred1 = jax.random.normal(k1, (N1, C), dtype=jnp.float32)
    labels1 = jax.random.randint(k2, (N1,), 0, C, dtype=jnp.int32)
    loss1 = jax.block_until_ready(sce_loss(pred1, labels1))
    ref1 = _reference_sce_loss(pred1, labels1)
    assert jnp.allclose(loss1, ref1, rtol=1e-5, atol=1e-5), (loss1, ref1)

    # Case 2: f32, multi-tile grid with a ragged last tile (mask + parallel grid).
    N2 = 300
    pred2 = jax.random.normal(k3, (N2, C), dtype=jnp.float32)
    labels2 = jax.random.randint(k4, (N2,), 0, C, dtype=jnp.int32)
    loss2 = jax.block_until_ready(sce_loss(pred2, labels2, tile_n=128))
    ref2 = _reference_sce_loss(pred2, labels2)
    assert jnp.allclose(loss2, ref2, rtol=1e-5, atol=1e-5), (loss2, ref2)

    # Case 3: bf16 logits (half the HBM traffic), ragged multi-tile grid.
    N3 = 777
    pred3 = jax.random.normal(k5, (N3, C), dtype=jnp.float32).astype(jnp.bfloat16)
    labels3 = jax.random.randint(k6, (N3,), 0, C, dtype=jnp.int32)
    loss3 = jax.block_until_ready(sce_loss(pred3, labels3, tile_n=256))
    ref3 = _reference_sce_loss(pred3, labels3)
    assert jnp.allclose(loss3, ref3, rtol=1e-4, atol=1e-4), (loss3, ref3)

    print("KERNEL_OK")
</pallas_src>

<mosaic_0001>
module attributes {stable_mosaic.version = 11 : i64} {
  func.func @_sce_loss_kernel(%arg0: i32, %arg1: memref<8x10xf32, #tpu.memory_space<vmem>>, %arg2: memref<1x8xi32, #tpu.memory_space<vmem>>, %arg3: memref<1x1x2xf32, #tpu.memory_space<smem>>) attributes {dimension_semantics = [#tpu.dimension_semantics<parallel>], iteration_bounds = array<i64: 1>, scalar_prefetch = 0 : i64, scratch_operands = 0 : i64, tpu.core_type = #tpu.core_type<tc>, window_params = [{transform_indices = @transform_0, window_bounds = array<i64: 8, 10>}, {transform_indices = @transform_1, window_bounds = array<i64: 1, 8>}, {transform_indices = @transform_2, window_bounds = array<i64: 1, 1, 2>}]} {
    %c0 = arith.constant 0 : index
    %c0_0 = arith.constant 0 : index
    %0 = vector.load %arg1[%c0, %c0_0] : memref<8x10xf32, #tpu.memory_space<vmem>>, vector<8x10xf32>
    %c0_1 = arith.constant 0 : index
    %c0_2 = arith.constant 0 : index
    %1 = vector.load %arg2[%c0_1, %c0_2] : memref<1x8xi32, #tpu.memory_space<vmem>>, vector<1x8xi32>
    %2 = tpu.iota {dimensions = array<i32: 0>} : vector<10x10xi32>
    %3 = tpu.iota {dimensions = array<i32: 1>} : vector<10x10xi32>
    %4 = arith.cmpi eq, %2, %3 : vector<10x10xi32>
    %5 = arith.extui %4 : vector<10x10xi1> to vector<10x10xi32>
    %6 = arith.sitofp %5 : vector<10x10xi32> to vector<10x10xf32>
    %cst = arith.constant dense<0.000000e+00> : vector<10x8xf32>
    %7 = tpu.matmul %6, %0, %cst {dimension_numbers = #tpu.dot_dimension_numbers<[1], [1], [0], [0], [0, 0, 1, 0], [], []>, precision = #tpu.contract_precision<fp32>} : vector<10x10xf32>, vector<8x10xf32>, vector<10x8xf32> -> vector<10x8xf32>
    %cst_3 = arith.constant dense<0xFF800000> : vector<8xf32>
    %8 = vector.multi_reduction <maximumf>, %7, %cst_3 [0] : vector<10x8xf32> to vector<8xf32>
    %9 = vector.shape_cast %8 : vector<8xf32> to vector<1x8xf32>
    %10 = vector.broadcast %9 : vector<1x8xf32> to vector<10x8xf32>
    %11 = arith.subf %7, %10 : vector<10x8xf32>
    %12 = math.exp %11 : vector<10x8xf32>
    %cst_4 = arith.constant dense<0.000000e+00> : vector<8xf32>
    %13 = vector.multi_reduction <add>, %12, %cst_4 [0] : vector<10x8xf32> to vector<8xf32>
    %14 = vector.shape_cast %13 : vector<8xf32> to vector<1x8xf32>
    %15 = tpu.reciprocal %14 : vector<1x8xf32> -> vector<1x8xf32>
    %16 = math.log %14 : vector<1x8xf32>
    %17 = tpu.iota {dimensions = array<i32: 0>} : vector<10x8xi32>
    %18 = vector.broadcast %1 : vector<1x8xi32> to vector<10x8xi32>
    %19 = arith.cmpi eq, %17, %18 : vector<10x8xi32>
    %20 = arith.extui %19 : vector<10x8xi1> to vector<10x8xi32>
    %21 = arith.sitofp %20 : vector<10x8xi32> to vector<10x8xf32>
    %22 = arith.mulf %21, %11 : vector<10x8xf32>
    %cst_5 = arith.constant dense<0.000000e+00> : vector<8xf32>
    %23 = vector.multi_reduction <add>, %22, %cst_5 [0] : vector<10x8xf32> to vector<8xf32>
    %24 = vector.shape_cast %23 : vector<8xf32> to vector<1x8xf32>
    %25 = arith.subf %16, %24 : vector<1x8xf32>
    %26 = vector.broadcast %15 : vector<1x8xf32> to vector<10x8xf32>
    %27 = arith.mulf %12, %26 : vector<10x8xf32>
    %cst_6 = arith.constant 1.000000e-07 : f32
    %28 = vector.broadcast %cst_6 : f32 to vector<10x8xf32>
    %29 = arith.maximumf %27, %28 : vector<10x8xf32>
    %cst_7 = arith.constant dense<0.000000e+00> : vector<8xf32>
    %30 = vector.multi_reduction <add>, %29, %cst_7 [0] : vector<10x8xf32> to vector<8xf32>
    %31 = vector.shape_cast %30 : vector<8xf32> to vector<1x8xf32>
    %32 = arith.mulf %21, %12 : vector<10x8xf32>
    %cst_8 = arith.constant dense<0.000000e+00> : vector<8xf32>
    %33 = vector.multi_reduction <add>, %32, %cst_8 [0] : vector<10x8xf32> to vector<8xf32>
    %34 = vector.shape_cast %33 : vector<8xf32> to vector<1x8xf32>
    %35 = arith.mulf %34, %15 : vector<1x8xf32>
    %cst_9 = arith.constant 1.000000e-07 : f32
    %36 = vector.broadcast %cst_9 : f32 to vector<1x8xf32>
    %37 = arith.maximumf %35, %36 : vector<1x8xf32>
    %38 = arith.subf %31, %37 : vector<1x8xf32>
    %cst_10 = arith.constant 9.21034049 : f32
    %39 = vector.broadcast %cst_10 : f32 to vector<1x8xf32>
    %40 = arith.mulf %39, %38 : vector<1x8xf32>
    %41 = vector.shape_cast %25 : vector<1x8xf32> to vector<1x1x8xf32>
    %cst_11 = arith.constant dense<0.000000e+00> : vector<1xf32>
    %42 = vector.multi_reduction <add>, %41, %cst_11 [1, 2] : vector<1x1x8xf32> to vector<1xf32>
    %43 = vector.shape_cast %42 : vector<1xf32> to vector<1x1x1xf32>
    %44 = vector.extract %43[0, 0, 0] : f32 from vector<1x1x1xf32>
    %c0_12 = arith.constant 0 : index
    %c0_13 = arith.constant 0 : index
    %c0_14 = arith.constant 0 : index
    %45 = memref.load %arg3[%c0_12, %c0_13, %c0_14] : memref<1x1x2xf32, #tpu.memory_space<smem>>
    memref.store %44, %arg3[%c0_12, %c0_13, %c0_14] : memref<1x1x2xf32, #tpu.memory_space<smem>>
    %46 = vector.shape_cast %40 : vector<1x8xf32> to vector<1x1x8xf32>
    %cst_15 = arith.constant dense<0.000000e+00> : vector<1xf32>
    %47 = vector.multi_reduction <add>, %46, %cst_15 [1, 2] : vector<1x1x8xf32> to vector<1xf32>
    %48 = vector.shape_cast %47 : vector<1xf32> to vector<1x1x1xf32>
    %49 = vector.extract %48[0, 0, 0] : f32 from vector<1x1x1xf32>
    %c0_16 = arith.constant 0 : index
    %c0_17 = arith.constant 0 : index
    %c1 = arith.constant 1 : index
    %50 = memref.load %arg3[%c0_16, %c0_17, %c1] : memref<1x1x2xf32, #tpu.memory_space<smem>>
    memref.store %49, %arg3[%c0_16, %c0_17, %c1] : memref<1x1x2xf32, #tpu.memory_space<smem>>
    return
  }
  func.func @transform_0(%arg0: i32) -> (i32, i32) {
    %c0_i32 = arith.constant 0 : i32
    %c0_i32_0 = arith.constant 0 : i32
    return %arg0, %c0_i32 : i32, i32
  }
  func.func @transform_1(%arg0: i32) -> (i32, i32) {
    %c0_i32 = arith.constant 0 : i32
    %c0_i32_0 = arith.constant 0 : i32
    return %c0_i32, %arg0 : i32, i32
  }
  func.func @transform_2(%arg0: i32) -> (i32, i32, i32) {
    %c0_i32 = arith.constant 0 : i32
    %c0_i32_0 = arith.constant 0 : i32
    %c0_i32_1 = arith.constant 0 : i32
    return %arg0, %c0_i32, %c0_i32_0 : i32, i32, i32
  }
}

</mosaic_0001>

<bundles_post_ra>
// kernel: tpu_custom_call.1
= control target key start
LH: loop header
LB: loop body
LE: loop exit
PB: predicated region body
PF: predicated region fallthrough
CT: control target
= control target key end

     0   :  { %7 = vsyncpa [#allocation3], 0  ;;  %s853_s0 = inlined_call_operand.hbm [shape: f32[8,10], index: 0, kind: input, shape index: {}]   ;;  %s854_s1 = inlined_call_operand.vmem [shape: s32[1,8], index: 1, kind: input, shape index: {}]   ;;  %s855_s2 = inlined_call_operand.hbm [shape: f32[1,1,2], index: 2, kind: output, shape index: {}]  }
   0x1   :  { %8 = vsyncpa [#allocation4], 0  ;;  %s774_s9 = smov [#allocation2]   ;;  %s738_s13 = scalar_lea.hbm %s853_s0, 128 }
   0x2   :  { %s15_s10 = sshll.u32 %s774_s9, 4  ;;  %p739_p0 = scmp.ne.s32.totalorder %s853_s0, %s738_s13  ;;  %s16_s10 = int_to_ptr.vmem [resolvable:$true] %s15_s10 }
   0x3   :  { %p742_p1 = scmp.lt.u32.totalorder %s738_s13, %s853_s0 }
   0x5   :  { %p744_p2 = pnand %p742_p1, %p739_p0 }
   0x7   :  { %747 = shalt.err (!%p744_p2)
}
   0x8   :  { %s748_s18 = scalar_lea.vmem %s16_s10, 128  ;;  %p753_p4 = scmp.lt.s32.totalorder %s16_s10, %s16_s10 }
   0x9   :  { %p749_p3 = scmp.ne.s32.totalorder %s16_s10, %s748_s18  ;;  %p754_p5 = scmp.lt.s32.totalorder %s748_s18, %s748_s18 }
   0xb   :  { %p755_p6 = por %p754_p5, %p753_p4 }
   0xd   :  { %p756_p7 = pnand %p755_p6, %p749_p3 }
   0xf   :  { %759 = shalt.err (!%p756_p7)
}
  0x10   :  { %18 = dma.hbm_to_vmem [thread:$0]  %s853_s0, 128, %s16_s10, [#allocation3]  }
  0x11   :  { %770 = dma.done.wait [#allocation3], 128  }
  0x12   :  { %771 = vsyncadd [#allocation3], 4294967168  ;;  %v26_v0 = vlaneseq  ;;  %vm37_vm0 = vcmask 80896   ;;  %v775_v4 = vmov 0.0   ;;  %v24_v7 = vld [vmem:[#allocation2] sm:$0xff]  ;;  %vm538_vm3 = vcmask 58368  }
  0x13   :  { %v45_v10 = vsel %vm37_vm0, %v24_v7, 0  ;;  %vm536_vm4 = vcmask 64512   ;;  %v662_v36 = vld [vmem:[%s854_s1] ss:$0 sm:$0xff]  ;;  %vm615_vm7 = vcmask 57344   ;;  %s760_s25 = scalar_lea.hbm %s855_s2, 16 }
  0x14   :  { %v804_v1 = vshrl.u32 %v26_v0, 7  ;;  %v30_v2 = vand.u32 127, %v26_v0  ;;  %v48_v12 = vand.u32 4294901760, %v45_v10  ;;  %p761_p8 = scmp.ne.s32.totalorder %s855_s2, %s760_s25  ;;  %p764_p9 = scmp.lt.u32.totalorder %s760_s25, %s855_s2 }
  0x16   :  { %vm31_vm1 = vcmp.eq.s32.totalorder %v804_v1, %v30_v2  ;;  %v808_v3 = vadd.s32 8, %v804_v1  ;;  %698 = vmatprep.subr.mxu0 %v48_v12  ;;  %683 = vmatprep.subr.mxu1 %v48_v12  ;;  %v135_v17 = vsub.f32 %v45_v10, %v48_v12  ;;  %vm569_vm5 = vcmp.eq.s32.totalorder %v804_v1, %v662_v36  ;;  %p766_p10 = pnand %p764_p9, %p761_p8 }
  0x17   :  { %v654_v5 = vsel %vm31_vm1, 1.0, %v775_v4  ;;  %699 = vmatpush3.xpose.msra.mxu0 %v48_v12  ;;  %684 = vmatpush3.xpose.msra.mxu1 %v48_v12  ;;  %v663_v40 = vsel %vm569_vm5, 1.0, %v775_v4 }
  0x18   :  { %v39_v6 = vsel %vm37_vm0, %v654_v5, 0  ;;  %vm32_vm2 = vcmp.eq.s32.totalorder %v808_v3, %v30_v2  ;;  %v136_v20 = vand.u32 4294901760, %v135_v17  ;;  %vm570_vm6 = vcmp.eq.s32.totalorder %v808_v3, %v662_v36 }
  0x19   :  { %v114_v8 = vsub.f32 %v39_v6, %v39_v6  ;;  %v655_v9 = vsel %vm32_vm2, 1.0, %v775_v4  ;;  %v664_v41 = vsel %vm570_vm6, 1.0, %v775_v4 }
  0x1a   :  { %v42_v11 = vsel %vm37_vm0, %v655_v9, 0  ;;  %v137_v22 = vsub.f32 %v135_v17, %v136_v20  ;;  %703 = vmatprep.subr.mxu0 %v136_v20 }
  0x1b   :  { %v115_v13 = vand.u32 4294901760, %v114_v8  ;;  %v124_v14 = vsub.f32 %v42_v11, %v42_v11 }
  0x1c   :  { %v138_v23 = vand.u32 4294901760, %v137_v22 }
  0x1d   :  { %v125_v15 = vand.u32 4294901760, %v124_v14  ;;  %v116_v16 = vsub.f32 %v114_v8, %v115_v13  ;;  %700 = vmatprep.mubr.f32.mxu0 %v115_v13 }
  0x1e   :  { %688 = vmatprep.subr.mxu1 %v138_v23 }
  0x1f   :  { %v117_v18 = vand.u32 4294901760, %v116_v16  ;;  %v126_v19 = vsub.f32 %v124_v14, %v125_v15  ;;  %701 = vmatmul.mubr.f32.vlgmr.msra.gmra.mrb[0].mxu0 %v125_v15 }
  0x20   :  { %705 = vmatprep.mubr.msk.f32.mxu0 %vm37_vm0, %v654_v5  ;;  %704 = vmatpush3.xpose.msra.mxu0 %v136_v20 }
  0x21   :  { %685 = vmatprep.mubr.f32.mxu1 %v117_v18  ;;  %v127_v21 = vand.u32 4294901760, %v126_v19  ;;  %708 = vmatprep.subr.mxu0 %v48_v12 }
  0x23   :  { %686 = vmatmul.mubr.f32.vlgmr.msra.gmra.mrb[0].mxu1 %v127_v21 }
  0x24   :  { %690 = vmatprep.mubr.msk.f32.mxu1 %vm37_vm0, %v654_v5  ;;  %689 = vmatpush3.xpose.msra.mxu1 %v138_v23 }
  0x25   :  { %693 = vmatprep.subr.mxu1 %v135_v17 }
  0x27   :  { %706 = vmatmul.mubr.msk.f32.vlgmr.msra.gmra.mrb[0].mxu0 %vm37_vm0, %v655_v9 }
  0x28   :  { %709 = vmatpush3.xpose.msra.mxu0 %v48_v12  ;;  %710 = vmatprep.mubr.msk.f32.mxu0 %vm37_vm0, %v654_v5 }
  0x2b   :  { %691 = vmatmul.mubr.msk.f32.vlgmr.msra.gmra.mrb[0].mxu1 %vm37_vm0, %v655_v9 }
  0x2c   :  { %694 = vmatpush3.xpose.msra.mxu1 %v135_v17  ;;  %695 = vmatprep.mubr.f32.mxu1 %v114_v8 }
  0x2f   :  { %711 = vmatmul.mubr.msk.f32.vlgmr.msra.gmra.mrb[0].mxu0 %vm37_vm0, %v655_v9 }
  0x33   :  { %696 = vmatmul.mubr.f32.vlgmr.msra.gmra.mrb[0].mxu1 %v124_v14 }
 0x102   :  { %v712_v24 = vpop.f32.mrb[0].mxu0 }
 0x103   :  { %v526_v25 = vpop.f32.mrb[1].mxu0 }
 0x106   :  { %v697_v26 = vpop.f32.mrb[0].mxu1 }
 0x107   :  { %v713_v27 = vadd.f32 %v712_v24, %v697_v26  ;;  %v285_v28 = vpop.f32.mrb[1].mxu1 }
 0x108   :  { %v714_v29 = vadd.f32 %v526_v25, %v285_v28 }
 0x109   :  { %v539_v30 = vsel %vm538_vm3, %v713_v27, -inf }
 0x10a   :  { %v537_v31 = vsel %vm536_vm4, %v714_v29, -inf }
 0x10b   :  { %v540_v32 = vmax.f32 %v537_v31, %v539_v30 }
 0x10d   :  { %v541_v33 = vrot.slane %v540_v32, 4 }
 0x10f   :  { %v542_v34 = vmax.f32 %v540_v32, %v541_v33 }
 0x111   :  { %v543_v35 = vrot.slane %v542_v34, 2 }
 0x113   :  { %v544_v37 = vmax.f32 %v542_v34, %v543_v35 }
 0x115   :  { %v545_v38 = vrot.slane %v544_v37, 1 }
 0x117   :  { %v546_v39 = vmax.f32 %v544_v37, %v545_v38 }
 0x119   :  { %v547_v42 = vsub.f32 %v714_v29, %v546_v39  ;;  %v548_v43 = vsub.f32 %v713_v27, %v546_v39 }
 0x11b   :  { %v549_v44 = vmul.f32 1.442695, %v547_v42  ;;  %v551_v45 = vmul.f32 1.442695, %v548_v43  ;;  %v575_v46 = vmul.f32 %v663_v40, %v547_v42  ;;  %v576_v47 = vmul.f32 %v664_v41, %v548_v43 }
 0x11d   :  { %730 = vpow2.f32 %v549_v44  ;;  %v577_v48 = vsel %vm536_vm4, %v575_v46, 0.0  ;;  %v578_v49 = vsel %vm538_vm3, %v576_v47, 0.0 }
 0x11e   :  { %732 = vpow2.f32 %v551_v45  ;;  %v579_v50 = vadd.f32 %v578_v49, %v577_v48 }
 0x120   :  { %v580_v0 = vrot.slane %v579_v50, 4 }
 0x122   :  { %v581_v4 = vadd.f32 %v580_v0, %v579_v50 }
 0x124   :  { %v582_v8 = vrot.slane %v581_v4, 2 }
 0x126   :  { %v583_v10 = vadd.f32 %v582_v8, %v581_v4 }
 0x127   :  { %v731_v51 = vpop.eup %730 }
 0x128   :  { %v733_v52 = vpop.eup %732  ;;  %v553_v53 = vsel %vm536_vm4, %v731_v51, 0.0  ;;  %v600_v54 = vmul.f32 %v731_v51, %v663_v40  ;;  %v584_v12 = vrot.slane %v583_v10, 1 }
 0x129   :  { %v601_v55 = vmul.f32 %v733_v52, %v664_v41  ;;  %v554_v56 = vsel %vm538_vm3, %v733_v52, 0.0 }
 0x12a   :  { %v602_v57 = vsel %vm536_vm4, %v600_v54, 0.0  ;;  %v555_v58 = vadd.f32 %v554_v56, %v553_v53  ;;  %v585_v17 = vadd.f32 %v584_v12, %v583_v10 }
 0x12b   :  { %v603_v59 = vsel %vm538_vm3, %v601_v55, 0.0 }
 0x12c   :  { %v604_v60 = vadd.f32 %v603_v59, %v602_v57  ;;  %v556_v61 = vrot.slane %v555_v58, 4 }
 0x12e   :  { %v605_v62 = vrot.slane %v604_v60, 4  ;;  %v557_v63 = vadd.f32 %v556_v61, %v555_v58 }
 0x130   :  { %v558_v1 = vrot.slane %v557_v63, 2  ;;  %v606_v3 = vadd.f32 %v605_v62, %v604_v60 }
 0x132   :  { %v559_v2 = vadd.f32 %v558_v1, %v557_v63  ;;  %v607_v7 = vrot.slane %v606_v3, 2 }
 0x134   :  { %v560_v5 = vrot.slane %v559_v2, 1  ;;  %v608_v9 = vadd.f32 %v607_v7, %v606_v3 }
 0x136   :  { %v561_v6 = vadd.f32 %v560_v5, %v559_v2  ;;  %v609_v11 = vrot.slane %v608_v9, 1 }
 0x138   :  { %734 = vlog2.f32 %v561_v6  ;;  %v610_v14 = vadd.f32 %v609_v11, %v608_v9 }
 0x139   :  { %736 = vrcp.f32 %v561_v6 }
 0x142   :  { %v735_v13 = vpop.eup %734 }
 0x143   :  { %v737_v15 = vpop.eup %736  ;;  %v564_v16 = vmul.f32 0.6931472, %v735_v13 }
 0x144   :  { %v587_v18 = vmul.f32 %v737_v15, %v731_v51  ;;  %v588_v19 = vmul.f32 %v737_v15, %v733_v52  ;;  %v611_v20 = vmul.f32 %v737_v15, %v610_v14 }
 0x145   :  { %v586_v21 = vsub.f32 %v564_v16, %v585_v17 }
 0x146   :  { %v589_v22 = vmax.f32 %v587_v18, 1e-07  ;;  %v590_v23 = vmax.f32 %v588_v19, 1e-07  ;;  %v612_v34 = vmax.f32 %v611_v20, 1e-07 }
 0x147   :  { %v616_v24 = vsel %vm615_vm7, %v586_v21, 0.0 }
 0x148   :  { %617 = vadd.xlane.f32.xlu0 %v616_v24  ;;  %v591_v25 = vsel %vm536_vm4, %v589_v22, 0.0  ;;  %v592_v26 = vsel %vm538_vm3, %v590_v23, 0.0 }
 0x149   :  { %v593_v27 = vadd.f32 %v592_v26, %v591_v25 }
 0x14b   :  { %v594_v28 = vrot.slane %v593_v27, 4 }
 0x14d   :  { %v595_v29 = vadd.f32 %v594_v28, %v593_v27 }
 0x14f   :  { %v596_v30 = vrot.slane %v595_v29, 2 }
 0x151   :  { %v597_v31 = vadd.f32 %v596_v30, %v595_v29 }
 0x153   :  { %v598_v32 = vrot.slane %v597_v31, 1 }
 0x155   :  { %v599_v33 = vadd.f32 %v598_v32, %v597_v31 }
 0x157   :  { %v613_v35 = vsub.f32 %v599_v33, %v612_v34 }
 0x159   :  { %v614_v36 = vmul.f32 9.2103405, %v613_v35 }
 0x15b   :  { %v628_v37 = vsel %vm615_vm7, %v614_v36, 0.0 }
 0x15c   :  { %629 = vadd.xlane.f32.xlu0 %v628_v37 }
 0x1d5   :  { %v618_v38 = vpop.xlane.xlu0 %617 }
 0x1d6   :  { %v619_v39 = vrot.slane %v618_v38, 4 }
 0x1d8   :  { %v620_v40 = vadd.f32 %v619_v39, %v618_v38 }
 0x1da   :  { %v621_v41 = vrot.slane %v620_v40, 2 }
 0x1dc   :  { %v622_v42 = vadd.f32 %v621_v41, %v620_v40 }
 0x1de   :  { %v623_v43 = vrot.slane %v622_v42, 1 }
 0x1e0   :  { %v624_v44 = vadd.f32 %v623_v43, %v622_v42 }
 0x1e2   :  { %723 = vpush %v624_v44 }
 0x1e9   :  { %v630_v45 = vpop.xlane.xlu0 %629 }
 0x1ea   :  { %v631_v46 = vrot.slane %v630_v45, 4 }
 0x1ec   :  { %v632_v47 = vadd.f32 %v631_v46, %v630_v45 }
 0x1ee   :  { %v633_v48 = vrot.slane %v632_v47, 2 }
 0x1f0   :  { %v634_v49 = vadd.f32 %v633_v48, %v632_v47 }
 0x1f2   :  { %v635_v50 = vrot.slane %v634_v49, 1 }
 0x1f4   :  { %v636_v51 = vadd.f32 %v635_v50, %v634_v49 }
 0x1f6   :  { %725 = vpush %v636_v51 }
 0x213   :  { %s724_s1 = spop %723 }
 0x214   :  { %627 = sst [smem:[#allocation5]] %s724_s1 }
 0x227   :  { %s726_s22 = spop %725 }
 0x228   :  { %639 = sst [smem:[#allocation5 + $0x1]] %s726_s22 }
 0x229   :  { %769 = shalt.err (!%p766_p10)
}
 0x22a   :  { %s776_s30 = smov [#allocation5]  }
 0x22b   :  { %647 = dma.smem_to_hbm %s776_s30, 16, %s855_s2, [#allocation4]  }
 0x22c   :  { %772 = dma.done.wait [#allocation4], 16  }
 0x22d   :  { %773 = vsyncadd [#allocation4], 4294967280 }
 0x22e   :  { %651 = sfence }
 0x22f   :  { %652 = vsyncpa [#allocation3], 1 }
 0x230   :  { %653 = vsyncpa [#allocation4], 1 }

</bundles_post_ra>
